<compile_context>
chip_gen: v5e
topology: v5e:2x2
jax: 0.10.0
libtpu: 0.0.40
codegen_flags: <defaults>
</compile_context>

<pallas_src>
import functools

import jax
import jax.numpy as jnp
from jax.experimental import pallas as pl
from jax.experimental.pallas import tpu as pltpu


def _round_up(x, m):
    return (x + m - 1) // m * m


def _match_kernel(x1_ref, x2_ref, fused_ref, b_ref, out_ref, r1_acc, r2_acc):
    # x1_ref, x2_ref : [TB, L]  int32 token-id tiles (one per side, fetched once per batch tile)
    # fused_ref      : [VC, Op] f32   -- j-th vocab chunk of (emb_table @ W^T) / L
    # b_ref          : [1, Op]  f32   -- fc bias, zero-padded
    # out_ref        : [1, TB, 1] f32 -- cosine distance for this batch tile
    # r1_acc, r2_acc : [TB, Op] f32 VMEM accumulators, carried across the vocab ("arbitrary") axis
    j = pl.program_id(1)
    TB, L = x1_ref.shape
    VC, Op = fused_ref.shape

    @pl.when(j == 0)
    def _():
        r1_acc[...] = jnp.zeros_like(r1_acc)
        r2_acc[...] = jnp.zeros_like(r2_acc)

    # Global token ids covered by this vocab chunk.
    iota_v = j * VC + jax.lax.broadcasted_iota(jnp.int32, (TB, VC), 1)
    fchunk = fused_ref[...]

    def accumulate(ids_ref, acc_ref):
        ids = ids_ref[...]
        # counts[b, v] = #occurrences of token (j*VC + v) in row b == sum_L one_hot.
        # Accumulated as int32; converted to f32 once (cuts ~1/3 of the VALU ops here).
        counts = jnp.zeros((TB, VC), jnp.int32)
        for l in range(L):  # L is static and small
            counts = counts + (iota_v == ids[:, l:l + 1]).astype(jnp.int32)
        acc_ref[...] += jnp.dot(counts.astype(jnp.float32), fchunk,
                                preferred_element_type=jnp.float32)

    # Processed sequentially (not concatenated) to keep the live set at one [TB, VC] tile.
    accumulate(x1_ref, r1_acc)
    accumulate(x2_ref, r2_acc)

    @pl.when(j == pl.num_programs(1) - 1)
    def _():
        bias = b_ref[...]
        r1 = r1_acc[...] + bias          # Representation(x1) tile, [TB, Op]
        r2 = r2_acc[...] + bias          # Representation(x2) tile
        # F.normalize(eps=1e-12): x / max(||x||, eps) == x * rsqrt(max(||x||^2, eps^2)).
        eps2 = jnp.float32(1e-24)
        inv1 = jax.lax.rsqrt(jnp.maximum(jnp.sum(r1 * r1, axis=-1, keepdims=True), eps2))
        inv2 = jax.lax.rsqrt(jnp.maximum(jnp.sum(r2 * r2, axis=-1, keepdims=True), eps2))
        cosine = jnp.sum(r1 * r2, axis=-1, keepdims=True) * inv1 * inv2     # [TB, 1]
        out_ref[...] = (1.0 - cosine).reshape(1, TB, 1)


def prepare_match_weights(emb_table, fc_w_t, fc_b, max_len):
    """Call ONCE per weight set (hoisted out of the per-forward path).

    Algebraic pre-fusion: mean_L(emb(x) @ W^T + b) == counts(x) @ ((table @ W^T)/L) + b,
    with everything zero-padded to lane-dense (multiple-of-128) shapes.  Padded rows/columns
    are zero, so norms and the cosine are unchanged.
    """
    V, E = emb_table.shape
    O = fc_w_t.shape[1]
    fused = jnp.dot(emb_table.astype(jnp.float32), fc_w_t.astype(jnp.float32)) / max_len  # [V, O]
    Vp = _round_up(V, 128)
    Op = _round_up(O, 128)
    fused_p = jnp.zeros((Vp, Op), jnp.float32).at[:V, :O].set(fused)
    bias_p = jnp.zeros((1, Op), jnp.float32).at[:, :O].set(
        jnp.reshape(fc_b.astype(jnp.float32), (1, O)))
    return fused_p, bias_p


@functools.partial(jax.jit, static_argnames=("batch_tile", "vocab_chunk"))
def match_layer_forward(x1, x2, fused_p, bias_p, batch_tile=None, vocab_chunk=128):
    """Cosine distance [B] between Representation(x1) and Representation(x2).

    x1, x2          : [B, L] int token ids (values in [0, V))
    fused_p, bias_p : outputs of prepare_match_weights (call once, reuse across forwards)
    """
    B, L = x1.shape
    Vp, Op = fused_p.shape

    # Batch tile: multiple of 8; default keeps nb >= 2 (when B >= 16) so v7x's second
    # TensorCore gets work via the "parallel" batch axis.
    if batch_tile is None:
        TB = min(128, _round_up(max((B + 1) // 2, 1), 8))
    else:
        TB = max(8, _round_up(int(batch_tile), 8))
    Bp = _round_up(B, TB)
    nb = Bp // TB

    # Vocab chunk: multiple of 128 dividing Vp; caps vreg/VMEM use independently of V.
    VC = min(Vp, max(128, _round_up(int(vocab_chunk), 128)))
    if Vp % VC:
        VC = 128  # Vp is always a multiple of 128
    n_vc = Vp // VC

    x1 = x1.astype(jnp.int32)
    x2 = x2.astype(jnp.int32)
    if Bp != B:
        pad = jnp.zeros((Bp - B, L), jnp.int32)
        x1 = jnp.concatenate([x1, pad], axis=0)
        x2 = jnp.concatenate([x2, pad], axis=0)

    out = pl.pallas_call(
        _match_kernel,
        out_shape=jax.ShapeDtypeStruct((nb, TB, 1), jnp.float32),
        grid_spec=pltpu.PrefetchScalarGridSpec(
            num_scalar_prefetch=0,
            grid=(nb, n_vc),                                   # vocab (reduction) axis last
            in_specs=[
                pl.BlockSpec((TB, L), lambda i, j: (i, 0)),    # x1 tile (constant over j)
                pl.BlockSpec((TB, L), lambda i, j: (i, 0)),    # x2 tile (constant over j)
                pl.BlockSpec((VC, Op), lambda i, j: (j, 0)),   # streamed vocab chunk of fused table
                pl.BlockSpec((1, Op), lambda i, j: (0, 0)),    # bias (tiny, resident)
            ],
            out_specs=pl.BlockSpec((1, TB, 1), lambda i, j: (i, 0, 0)),
            scratch_shapes=[pltpu.VMEM((TB, Op), jnp.float32),
                            pltpu.VMEM((TB, Op), jnp.float32)],
        ),
        # TODO(synk): set vmem_limit_bytes here for production V on v5e (16 MiB scoped default).
        compiler_params=pltpu.CompilerParams(
            dimension_semantics=("parallel", "arbitrary")),
    )(x1, x2, fused_p, bias_p)

    return out.reshape(Bp)[:B]


def _reference(x1, x2, emb_table, fc_w_t, fc_b):
    def rep(x):
        e = jnp.take(emb_table, x, axis=0)               # [B, L, E]
        y = e @ fc_w_t + fc_b.reshape(1, 1, -1)          # [B, L, O]
        return jnp.mean(y, axis=1)                       # [B, O]
    r1, r2 = rep(x1), rep(x2)
    eps = 1e-12
    n1 = r1 / jnp.maximum(jnp.linalg.norm(r1, axis=-1, keepdims=True), eps)
    n2 = r2 / jnp.maximum(jnp.linalg.norm(r2, axis=-1, keepdims=True), eps)
    return 1.0 - jnp.sum(n1 * n2, axis=-1)


if __name__ == "__main__":
    def run_case(seed, B, L, V, E, O):
        key = jax.random.PRNGKey(seed)
        k_tab, k_w, k_b, k_x1, k_x2 = jax.random.split(key, 5)
        emb_table = jax.random.normal(k_tab, (V, E), dtype=jnp.float32).at[0].set(0.0)  # padding_idx=0
        fc_w = jax.random.normal(k_w, (O, E), dtype=jnp.float32) * 0.1   # PyTorch Linear weight [O, E]
        fc_b = jax.random.normal(k_b, (O,), dtype=jnp.float32) * 0.1
        x1 = jax.random.randint(k_x1, (B, L), 0, V, dtype=jnp.int32)
        x2 = jax.random.randint(k_x2, (B, L), 0, V, dtype=jnp.int32)

        fused_p, bias_p = prepare_match_weights(emb_table, fc_w.T, fc_b, L)  # hoisted, one-shot
        dist = jax.block_until_ready(match_layer_forward(x1, x2, fused_p, bias_p))

        ref = _reference(x1, x2, emb_table, fc_w.T, fc_b)
        assert dist.shape == (B,)
        assert jnp.allclose(dist, ref, atol=1e-5, rtol=1e-5), (dist, ref)

    # config from the module: vocab=64, embedding_dim=32, hidden_dim unused, out_dim=16, max_len=8
    run_case(0, B=2, L=8, V=64, E=32, O=16)
    # extra coverage: nb > 1 batch tiles (parallel axis) and n_vc > 1 vocab chunks (accumulator path)
    run_case(1, B=20, L=8, V=200, E=32, O=16)

    print("KERNEL_OK")
</pallas_src>

<mosaic_0001>
module attributes {stable_mosaic.version = 11 : i64} {
  func.func @_match_kernel(%arg0: i32, %arg1: i32, %arg2: memref<8x8xi32, #tpu.memory_space<vmem>>, %arg3: memref<8x8xi32, #tpu.memory_space<vmem>>, %arg4: memref<128x128xf32, #tpu.memory_space<vmem>>, %arg5: memref<1x128xf32, #tpu.memory_space<vmem>>, %arg6: memref<1x8x1xf32, #tpu.memory_space<vmem>>, %arg7: memref<8x128xf32, #tpu.memory_space<vmem>>, %arg8: memref<8x128xf32, #tpu.memory_space<vmem>>) attributes {dimension_semantics = [#tpu.dimension_semantics<parallel>, #tpu.dimension_semantics<arbitrary>], iteration_bounds = array<i64: 1, 1>, scalar_prefetch = 0 : i64, scratch_operands = 2 : i64, tpu.core_type = #tpu.core_type<tc>, window_params = [{transform_indices = @transform_0, window_bounds = array<i64: 8, 8>}, {transform_indices = @transform_1, window_bounds = array<i64: 8, 8>}, {transform_indices = @transform_2, window_bounds = array<i64: 128, 128>}, {pipeline_mode = #tpu.pipeline_mode<synchronous>, transform_indices = @transform_3, window_bounds = array<i64: 1, 128>}, {transform_indices = @transform_4, window_bounds = array<i64: 1, 8, 1>}]} {
    %c0_i32 = arith.constant 0 : i32
    %0 = arith.cmpi eq, %arg1, %c0_i32 : i32
    %1 = arith.extui %0 : i1 to i32
    %c0_i32_0 = arith.constant 0 : i32
    %2 = arith.cmpi ne, %1, %c0_i32_0 : i32
    scf.if %2 {
      %cst_19 = arith.constant 0.000000e+00 : f32
      %105 = vector.broadcast %cst_19 : f32 to vector<8x128xf32>
      %c0_20 = arith.constant 0 : index
      %c0_21 = arith.constant 0 : index
      %106 = vector.load %arg7[%c0_20, %c0_21] : memref<8x128xf32, #tpu.memory_space<vmem>>, vector<8x128xf32>
      tpu.vector_store %arg7[%c0_20, %c0_21], %105 {strides = array<i32>} : memref<8x128xf32, #tpu.memory_space<vmem>>, vector<8x128xf32>,
      %cst_22 = arith.constant 0.000000e+00 : f32
      %107 = vector.broadcast %cst_22 : f32 to vector<8x128xf32>
      %c0_23 = arith.constant 0 : index
      %c0_24 = arith.constant 0 : index
      %108 = vector.load %arg8[%c0_23, %c0_24] : memref<8x128xf32, #tpu.memory_space<vmem>>, vector<8x128xf32>
      tpu.vector_store %arg8[%c0_23, %c0_24], %107 {strides = array<i32>} : memref<8x128xf32, #tpu.memory_space<vmem>>, vector<8x128xf32>,
    } else {
    }
    %c128_i32 = arith.constant 128 : i32
    %3 = arith.muli %arg1, %c128_i32 : i32
    %4 = tpu.iota {dimensions = array<i32: 1>} : vector<8x128xi32>
    %5 = vector.broadcast %3 : i32 to vector<8x128xi32>
    %6 = arith.addi %5, %4 : vector<8x128xi32>
    %c0 = arith.constant 0 : index
    %c0_1 = arith.constant 0 : index
    %7 = vector.load %arg4[%c0, %c0_1] : memref<128x128xf32, #tpu.memory_space<vmem>>, vector<128x128xf32>
    %c0_2 = arith.constant 0 : index
    %c0_3 = arith.constant 0 : index
    %8 = vector.load %arg2[%c0_2, %c0_3] : memref<8x8xi32, #tpu.memory_space<vmem>>, vector<8x8xi32>
    %c0_i32_4 = arith.constant 0 : i32
    %9 = vector.broadcast %c0_i32_4 : i32 to vector<8x128xi32>
    %10 = vector.extract_strided_slice %8 {offsets = [0, 0], sizes = [8, 1], strides = [1, 1]} : vector<8x8xi32> to vector<8x1xi32>
    %11 = vector.broadcast %10 : vector<8x1xi32> to vector<8x128xi32>
    %12 = arith.cmpi eq, %6, %11 : vector<8x128xi32>
    %13 = arith.extui %12 : vector<8x128xi1> to vector<8x128xi32>
    %14 = arith.addi %9, %13 : vector<8x128xi32>
    %15 = vector.extract_strided_slice %8 {offsets = [0, 1], sizes = [8, 1], strides = [1, 1]} : vector<8x8xi32> to vector<8x1xi32>
    %16 = vector.broadcast %15 : vector<8x1xi32> to vector<8x128xi32>
    %17 = arith.cmpi eq, %6, %16 : vector<8x128xi32>
    %18 = arith.extui %17 : vector<8x128xi1> to vector<8x128xi32>
    %19 = arith.addi %14, %18 : vector<8x128xi32>
    %20 = vector.extract_strided_slice %8 {offsets = [0, 2], sizes = [8, 1], strides = [1, 1]} : vector<8x8xi32> to vector<8x1xi32>
    %21 = vector.broadcast %20 : vector<8x1xi32> to vector<8x128xi32>
    %22 = arith.cmpi eq, %6, %21 : vector<8x128xi32>
    %23 = arith.extui %22 : vector<8x128xi1> to vector<8x128xi32>
    %24 = arith.addi %19, %23 : vector<8x128xi32>
    %25 = vector.extract_strided_slice %8 {offsets = [0, 3], sizes = [8, 1], strides = [1, 1]} : vector<8x8xi32> to vector<8x1xi32>
    %26 = vector.broadcast %25 : vector<8x1xi32> to vector<8x128xi32>
    %27 = arith.cmpi eq, %6, %26 : vector<8x128xi32>
    %28 = arith.extui %27 : vector<8x128xi1> to vector<8x128xi32>
    %29 = arith.addi %24, %28 : vector<8x128xi32>
    %30 = vector.extract_strided_slice %8 {offsets = [0, 4], sizes = [8, 1], strides = [1, 1]} : vector<8x8xi32> to vector<8x1xi32>
    %31 = vector.broadcast %30 : vector<8x1xi32> to vector<8x128xi32>
    %32 = arith.cmpi eq, %6, %31 : vector<8x128xi32>
    %33 = arith.extui %32 : vector<8x128xi1> to vector<8x128xi32>
    %34 = arith.addi %29, %33 : vector<8x128xi32>
    %35 = vector.extract_strided_slice %8 {offsets = [0, 5], sizes = [8, 1], strides = [1, 1]} : vector<8x8xi32> to vector<8x1xi32>
    %36 = vector.broadcast %35 : vector<8x1xi32> to vector<8x128xi32>
    %37 = arith.cmpi eq, %6, %36 : vector<8x128xi32>
    %38 = arith.extui %37 : vector<8x128xi1> to vector<8x128xi32>
    %39 = arith.addi %34, %38 : vector<8x128xi32>
    %40 = vector.extract_strided_slice %8 {offsets = [0, 6], sizes = [8, 1], strides = [1, 1]} : vector<8x8xi32> to vector<8x1xi32>
    %41 = vector.broadcast %40 : vector<8x1xi32> to vector<8x128xi32>
    %42 = arith.cmpi eq, %6, %41 : vector<8x128xi32>
    %43 = arith.extui %42 : vector<8x128xi1> to vector<8x128xi32>
    %44 = arith.addi %39, %43 : vector<8x128xi32>
    %45 = vector.extract_strided_slice %8 {offsets = [0, 7], sizes = [8, 1], strides = [1, 1]} : vector<8x8xi32> to vector<8x1xi32>
    %46 = vector.broadcast %45 : vector<8x1xi32> to vector<8x128xi32>
    %47 = arith.cmpi eq, %6, %46 : vector<8x128xi32>
    %48 = arith.extui %47 : vector<8x128xi1> to vector<8x128xi32>
    %49 = arith.addi %44, %48 : vector<8x128xi32>
    %c0_5 = arith.constant 0 : index
    %c0_6 = arith.constant 0 : index
    %50 = vector.load %arg7[%c0_5, %c0_6] : memref<8x128xf32, #tpu.memory_space<vmem>>, vector<8x128xf32>
    %51 = arith.sitofp %49 : vector<8x128xi32> to vector<8x128xf32>
    %cst = arith.constant dense<0.000000e+00> : vector<8x128xf32>
    %52 = tpu.matmul %51, %7, %cst {dimension_numbers = #tpu.dot_dimension_numbers<[1], [0], [0], [1], [0, 0, 1, 1], [], []>} : vector<8x128xf32>, vector<128x128xf32>, vector<8x128xf32> -> vector<8x128xf32>
    %53 = arith.addf %50, %52 : vector<8x128xf32>
    %c0_7 = arith.constant 0 : index
    %c0_8 = arith.constant 0 : index
    %54 = vector.load %arg7[%c0_7, %c0_8] : memref<8x128xf32, #tpu.memory_space<vmem>>, vector<8x128xf32>
    tpu.vector_store %arg7[%c0_7, %c0_8], %53 {strides = array<i32>} : memref<8x128xf32, #tpu.memory_space<vmem>>, vector<8x128xf32>,
    %c0_9 = arith.constant 0 : index
    %c0_10 = arith.constant 0 : index
    %55 = vector.load %arg3[%c0_9, %c0_10] : memref<8x8xi32, #tpu.memory_space<vmem>>, vector<8x8xi32>
    %c0_i32_11 = arith.constant 0 : i32
    %56 = vector.broadcast %c0_i32_11 : i32 to vector<8x128xi32>
    %57 = vector.extract_strided_slice %55 {offsets = [0, 0], sizes = [8, 1], strides = [1, 1]} : vector<8x8xi32> to vector<8x1xi32>
    %58 = vector.broadcast %57 : vector<8x1xi32> to vector<8x128xi32>
    %59 = arith.cmpi eq, %6, %58 : vector<8x128xi32>
    %60 = arith.extui %59 : vector<8x128xi1> to vector<8x128xi32>
    %61 = arith.addi %56, %60 : vector<8x128xi32>
    %62 = vector.extract_strided_slice %55 {offsets = [0, 1], sizes = [8, 1], strides = [1, 1]} : vector<8x8xi32> to vector<8x1xi32>
    %63 = vector.broadcast %62 : vector<8x1xi32> to vector<8x128xi32>
    %64 = arith.cmpi eq, %6, %63 : vector<8x128xi32>
    %65 = arith.extui %64 : vector<8x128xi1> to vector<8x128xi32>
    %66 = arith.addi %61, %65 : vector<8x128xi32>
    %67 = vector.extract_strided_slice %55 {offsets = [0, 2], sizes = [8, 1], strides = [1, 1]} : vector<8x8xi32> to vector<8x1xi32>
    %68 = vector.broadcast %67 : vector<8x1xi32> to vector<8x128xi32>
    %69 = arith.cmpi eq, %6, %68 : vector<8x128xi32>
    %70 = arith.extui %69 : vector<8x128xi1> to vector<8x128xi32>
    %71 = arith.addi %66, %70 : vector<8x128xi32>
    %72 = vector.extract_strided_slice %55 {offsets = [0, 3], sizes = [8, 1], strides = [1, 1]} : vector<8x8xi32> to vector<8x1xi32>
    %73 = vector.broadcast %72 : vector<8x1xi32> to vector<8x128xi32>
    %74 = arith.cmpi eq, %6, %73 : vector<8x128xi32>
    %75 = arith.extui %74 : vector<8x128xi1> to vector<8x128xi32>
    %76 = arith.addi %71, %75 : vector<8x128xi32>
    %77 = vector.extract_strided_slice %55 {offsets = [0, 4], sizes = [8, 1], strides = [1, 1]} : vector<8x8xi32> to vector<8x1xi32>
    %78 = vector.broadcast %77 : vector<8x1xi32> to vector<8x128xi32>
    %79 = arith.cmpi eq, %6, %78 : vector<8x128xi32>
    %80 = arith.extui %79 : vector<8x128xi1> to vector<8x128xi32>
    %81 = arith.addi %76, %80 : vector<8x128xi32>
    %82 = vector.extract_strided_slice %55 {offsets = [0, 5], sizes = [8, 1], strides = [1, 1]} : vector<8x8xi32> to vector<8x1xi32>
    %83 = vector.broadcast %82 : vector<8x1xi32> to vector<8x128xi32>
    %84 = arith.cmpi eq, %6, %83 : vector<8x128xi32>
    %85 = arith.extui %84 : vector<8x128xi1> to vector<8x128xi32>
    %86 = arith.addi %81, %85 : vector<8x128xi32>
    %87 = vector.extract_strided_slice %55 {offsets = [0, 6], sizes = [8, 1], strides = [1, 1]} : vector<8x8xi32> to vector<8x1xi32>
    %88 = vector.broadcast %87 : vector<8x1xi32> to vector<8x128xi32>
    %89 = arith.cmpi eq, %6, %88 : vector<8x128xi32>
    %90 = arith.extui %89 : vector<8x128xi1> to vector<8x128xi32>
    %91 = arith.addi %86, %90 : vector<8x128xi32>
    %92 = vector.extract_strided_slice %55 {offsets = [0, 7], sizes = [8, 1], strides = [1, 1]} : vector<8x8xi32> to vector<8x1xi32>
    %93 = vector.broadcast %92 : vector<8x1xi32> to vector<8x128xi32>
    %94 = arith.cmpi eq, %6, %93 : vector<8x128xi32>
    %95 = arith.extui %94 : vector<8x128xi1> to vector<8x128xi32>
    %96 = arith.addi %91, %95 : vector<8x128xi32>
    %c0_12 = arith.constant 0 : index
    %c0_13 = arith.constant 0 : index
    %97 = vector.load %arg8[%c0_12, %c0_13] : memref<8x128xf32, #tpu.memory_space<vmem>>, vector<8x128xf32>
    %98 = arith.sitofp %96 : vector<8x128xi32> to vector<8x128xf32>
    %cst_14 = arith.constant dense<0.000000e+00> : vector<8x128xf32>
    %99 = tpu.matmul %98, %7, %cst_14 {dimension_numbers = #tpu.dot_dimension_numbers<[1], [0], [0], [1], [0, 0, 1, 1], [], []>} : vector<8x128xf32>, vector<128x128xf32>, vector<8x128xf32> -> vector<8x128xf32>
    %100 = arith.addf %97, %99 : vector<8x128xf32>
    %c0_15 = arith.constant 0 : index
    %c0_16 = arith.constant 0 : index
    %101 = vector.load %arg8[%c0_15, %c0_16] : memref<8x128xf32, #tpu.memory_space<vmem>>, vector<8x128xf32>
    tpu.vector_store %arg8[%c0_15, %c0_16], %100 {strides = array<i32>} : memref<8x128xf32, #tpu.memory_space<vmem>>, vector<8x128xf32>,
    %c0_i32_17 = arith.constant 0 : i32
    %102 = arith.cmpi eq, %arg1, %c0_i32_17 : i32
    %103 = arith.extui %102 : i1 to i32
    %c0_i32_18 = arith.constant 0 : i32
    %104 = arith.cmpi ne, %103, %c0_i32_18 : i32
    scf.if %104 {
      %c0_19 = arith.constant 0 : index
      %c0_20 = arith.constant 0 : index
      %105 = vector.load %arg5[%c0_19, %c0_20] : memref<1x128xf32, #tpu.memory_space<vmem>>, vector<1x128xf32>
      %c0_21 = arith.constant 0 : index
      %c0_22 = arith.constant 0 : index
      %106 = vector.load %arg7[%c0_21, %c0_22] : memref<8x128xf32, #tpu.memory_space<vmem>>, vector<8x128xf32>
      %107 = vector.broadcast %105 : vector<1x128xf32> to vector<8x128xf32>
      %108 = arith.addf %106, %107 : vector<8x128xf32>
      %c0_23 = arith.constant 0 : index
      %c0_24 = arith.constant 0 : index
      %109 = vector.load %arg8[%c0_23, %c0_24] : memref<8x128xf32, #tpu.memory_space<vmem>>, vector<8x128xf32>
      %110 = vector.broadcast %105 : vector<1x128xf32> to vector<8x128xf32>
      %111 = arith.addf %109, %110 : vector<8x128xf32>
      %112 = arith.mulf %108, %108 : vector<8x128xf32>
      %cst_25 = arith.constant dense<0.000000e+00> : vector<8xf32>
      %113 = vector.multi_reduction <add>, %112, %cst_25 [1] : vector<8x128xf32> to vector<8xf32>
      %114 = vector.shape_cast %113 : vector<8xf32> to vector<8x1xf32>
      %cst_26 = arith.constant 1.000000e-24 : f32
      %115 = vector.broadcast %cst_26 : f32 to vector<8x1xf32>
      %116 = arith.maximumf %114, %115 : vector<8x1xf32>
      %117 = math.rsqrt %116 : vector<8x1xf32>
      %118 = arith.mulf %111, %111 : vector<8x128xf32>
      %cst_27 = arith.constant dense<0.000000e+00> : vector<8xf32>
      %119 = vector.multi_reduction <add>, %118, %cst_27 [1] : vector<8x128xf32> to vector<8xf32>
      %120 = vector.shape_cast %119 : vector<8xf32> to vector<8x1xf32>
      %cst_28 = arith.constant 1.000000e-24 : f32
      %121 = vector.broadcast %cst_28 : f32 to vector<8x1xf32>
      %122 = arith.maximumf %120, %121 : vector<8x1xf32>
      %123 = math.rsqrt %122 : vector<8x1xf32>
      %124 = arith.mulf %108, %111 : vector<8x128xf32>
      %cst_29 = arith.constant dense<0.000000e+00> : vector<8xf32>
      %125 = vector.multi_reduction <add>, %124, %cst_29 [1] : vector<8x128xf32> to vector<8xf32>
      %126 = vector.shape_cast %125 : vector<8xf32> to vector<8x1xf32>
      %127 = arith.mulf %126, %117 : vector<8x1xf32>
      %128 = arith.mulf %127, %123 : vector<8x1xf32>
      %cst_30 = arith.constant 1.000000e+00 : f32
      %129 = vector.broadcast %cst_30 : f32 to vector<8x1xf32>
      %130 = arith.subf %129, %128 : vector<8x1xf32>
      %131 = vector.shape_cast %130 : vector<8x1xf32> to vector<1x8x1xf32>
      %c0_31 = arith.constant 0 : index
      %c0_32 = arith.constant 0 : index
      %c0_33 = arith.constant 0 : index
      %132 = vector.load %arg6[%c0_31, %c0_32, %c0_33] : memref<1x8x1xf32, #tpu.memory_space<vmem>>, vector<1x8x1xf32>
      tpu.vector_store %arg6[%c0_31, %c0_32, %c0_33], %131 {strides = array<i32>} : memref<1x8x1xf32, #tpu.memory_space<vmem>>, vector<1x8x1xf32>,
    } else {
    }
    return
  }
  func.func @transform_0(%arg0: i32, %arg1: i32) -> (i32, i32) {
    %c0_i32 = arith.constant 0 : i32
    %c0_i32_0 = arith.constant 0 : i32
    return %arg0, %c0_i32 : i32, i32
  }
  func.func @transform_1(%arg0: i32, %arg1: i32) -> (i32, i32) {
    %c0_i32 = arith.constant 0 : i32
    %c0_i32_0 = arith.constant 0 : i32
    return %arg0, %c0_i32 : i32, i32
  }
  func.func @transform_2(%arg0: i32, %arg1: i32) -> (i32, i32) {
    %c0_i32 = arith.constant 0 : i32
    %c0_i32_0 = arith.constant 0 : i32
    return %arg1, %c0_i32 : i32, i32
  }
  func.func @transform_3(%arg0: i32, %arg1: i32) -> (i32, i32) {
    %c0_i32 = arith.constant 0 : i32
    %c0_i32_0 = arith.constant 0 : i32
    %c0_i32_1 = arith.constant 0 : i32
    return %c0_i32, %c0_i32_0 : i32, i32
  }
  func.func @transform_4(%arg0: i32, %arg1: i32) -> (i32, i32, i32) {
    %c0_i32 = arith.constant 0 : i32
    %c0_i32_0 = arith.constant 0 : i32
    %c0_i32_1 = arith.constant 0 : i32
    return %arg0, %c0_i32, %c0_i32_0 : i32, i32, i32
  }
}

</mosaic_0001>

<bundles_post_ra>
// kernel: match_layer_forward.1
= control target key start
LH: loop header
LB: loop body
LE: loop exit
PB: predicated region body
PF: predicated region fallthrough
CT: control target
= control target key end

     0   :  { %9 = vsyncpa [#allocation5], 0  ;;  %s312_s18 = smov [#allocation4]   ;;  %s313_s20 = smov 128   ;;  %s381_s0 = inlined_call_operand.vmem [shape: s32[8,8], index: 0, kind: input, shape index: {}]   ;;  %s382_s1 = inlined_call_operand.vmem [shape: s32[8,8], index: 1, kind: input, shape index: {}]   ;;  %s383_s2 = inlined_call_operand.hbm [shape: f32[128,128], index: 2, kind: input, shape index: {}]   ;;  %s384_s3 = inlined_call_operand.vmem [shape: f32[1,128], index: 3, kind: input, shape index: {}]   ;;  %s385_s4 = inlined_call_operand.vmem [shape: f32[1,8,1], index: 4, kind: output, shape index: {}]  }
   0x1   :  { %s18_s17 = sshll.u32 %s383_s2, 4  ;;  %s20_s19 = sshll.u32 %s312_s18, 4  ;;  %s19_s17 = int_to_ptr.hbm [resolvable:$true] %s18_s17  ;;  %s21_s19 = int_to_ptr.vmem [resolvable:$true] %s20_s19 }
   0x2   :  { %s314_s21 = smov 8  }
   0x3   :  { %26 = dma.hbm_to_vmem [thread:$0]  %s19_s17, 2048, %s21_s19, [#allocation5], %s313_s20, %s313_s20, %s314_s21  }
   0x4   :  { %310 = dma.done.wait [#allocation5], 2048  }
   0x5   :  { %311 = vsyncadd [#allocation5], 4294965248  ;;  %v315_v0 = vmov 2   ;;  %v316_v1 = vmov 0   ;;  %v317_v2 = vmov 1   ;;  %v60_v3 = vld [vmem:[%s381_s0] sm:$0xff]  ;;  %v40_v30 = vlaneseq }
   0x6   :  { %269 = vset.pattern.permute.xlu1 %v315_v0  ;;  %267 = vset.pattern.permute.xlu0 %v316_v1  ;;  %v132_v4 = vld [vmem:[%s382_s1] sm:$0xff]  ;;  %v318_v5 = vmov 3   ;;  %v319_v6 = vmov 4   ;;  %v320_v7 = vmov 5   ;;  %v321_v8 = vmov 7   ;;  %v59_v10 = vld [vmem:[#allocation4 + $0x78] sm:$0xff] }
   0x7   :  { %271 = vset.pattern.permute.xlu2 %v317_v2  ;;  %73 = vperm.xlu1 %269, %v60_v3   ;;  %v322_v9 = vmov 6   ;;  %v58_v11 = vld [vmem:[#allocation4 + $0x70] sm:$0xff]  ;;  %v57_v12 = vld [vmem:[#allocation4 + $0x68] sm:$0xff]  ;;  %v56_v13 = vld [vmem:[#allocation4 + $0x60] sm:$0xff]  ;;  %v41_v34 = vand.u32 127, %v40_v30 }
   0x8   :  { %62 = vperm.xlu0 %267, %v60_v3   ;;  %139 = vperm.xlu2 %271, %v132_v4   ;;  %v55_v14 = vld [vmem:[#allocation4 + $0x58] sm:$0xff]  ;;  %v54_v15 = vld [vmem:[#allocation4 + $0x50] sm:$0xff]  ;;  %v53_v17 = vld [vmem:[#allocation4 + $0x48] sm:$0xff] }
   0x9   :  { %110 = vmatpush.msra.mxu0 %v59_v10  ;;  %182 = vmatpush.msra.mxu1 %v59_v10  ;;  %v52_v18 = vld [vmem:[#allocation4 + $0x40] sm:$0xff]  ;;  %v51_v19 = vld [vmem:[#allocation4 + $0x38] sm:$0xff]  ;;  %v50_v20 = vld [vmem:[#allocation4 + $0x30] sm:$0xff] }
   0xa   :  { %v49_v21 = vld [vmem:[#allocation4 + $0x28] sm:$0xff]  ;;  %v48_v24 = vld [vmem:[#allocation4 + $0x20] sm:$0xff]  ;;  %v47_v26 = vld [vmem:[#allocation4 + $0x18] sm:$0xff] }
   0xb   :  { %111 = vmatpush.msra.mxu0 %v58_v11  ;;  %183 = vmatpush.msra.mxu1 %v58_v11  ;;  %v46_v27 = vld [vmem:[#allocation4 + $0x10] sm:$0xff]  ;;  %v45_v28 = vld [vmem:[#allocation4 + $0x8] sm:$0xff]  ;;  %v44_v31 = vld [vmem:[#allocation4] sm:$0xff] }
   0xd   :  { %112 = vmatpush.msra.mxu0 %v57_v12  ;;  %184 = vmatpush.msra.mxu1 %v57_v12 }
   0xf   :  { %270 = vset.pattern.permute.xlu1 %v316_v1  ;;  %113 = vmatpush.msra.mxu0 %v56_v13 }
  0x10   :  { %268 = vset.pattern.permute.xlu0 %v317_v2  ;;  %134 = vperm.xlu1 %270, %v132_v4  }
  0x11   :  { %67 = vperm.xlu0 %268, %v60_v3   ;;  %272 = vset.pattern.permute.xlu2 %v318_v5 }
  0x12   :  { %79 = vperm.xlu2 %272, %v60_v3   ;;  %185 = vmatpush.msra.mxu1 %v56_v13  ;;  %v281_v13 = vld [vmem:[%s384_s3] ss:$0 sm:$0xff] }
  0x13   :  { %114 = vmatpush.msra.mxu0 %v55_v14 }
  0x14   :  { %186 = vmatpush.msra.mxu1 %v55_v14 }
  0x15   :  { %115 = vmatpush.msra.mxu0 %v54_v15 }
  0x16   :  { %187 = vmatpush.msra.mxu1 %v54_v15 }
  0x17   :  { %116 = vmatpush.msra.mxu0 %v53_v17 }
  0x18   :  { %273 = vset.pattern.permute.xlu1 %v315_v0  ;;  %188 = vmatpush.msra.mxu1 %v53_v17 }
  0x19   :  { %275 = vset.pattern.permute.xlu0 %v318_v5  ;;  %145 = vperm.xlu1 %273, %v132_v4  }
  0x1a   :  { %151 = vperm.xlu0 %275, %v132_v4   ;;  %274 = vset.pattern.permute.xlu2 %v319_v6 }
  0x1b   :  { %85 = vperm.xlu2 %274, %v60_v3   ;;  %117 = vmatpush.msra.mxu0 %v52_v18 }
  0x1c   :  { %189 = vmatpush.msra.mxu1 %v52_v18 }
  0x1d   :  { %118 = vmatpush.msra.mxu0 %v51_v19 }
  0x1e   :  { %190 = vmatpush.msra.mxu1 %v51_v19 }
  0x1f   :  { %119 = vmatpush.msra.mxu0 %v50_v20 }
  0x20   :  { %191 = vmatpush.msra.mxu1 %v50_v20 }
  0x21   :  { %276 = vset.pattern.permute.xlu1 %v320_v7  ;;  %120 = vmatpush.msra.mxu0 %v49_v21 }
  0x22   :  { %279 = vset.pattern.permute.xlu0 %v321_v8  ;;  %91 = vperm.xlu1 %276, %v60_v3  }
  0x23   :  { %103 = vperm.xlu0 %279, %v60_v3   ;;  %157 = vperm.xlu2 %274, %v132_v4  }
  0x24   :  { %192 = vmatpush.msra.mxu1 %v49_v21  ;;  %121 = vmatpush.msra.mxu0 %v48_v24 }
  0x26   :  { %193 = vmatpush.msra.mxu1 %v48_v24  ;;  %122 = vmatpush.msra.mxu0 %v47_v26 }
  0x28   :  { %194 = vmatpush.msra.mxu1 %v47_v26  ;;  %123 = vmatpush.msra.mxu0 %v46_v27 }
  0x2a   :  { %277 = vset.pattern.permute.xlu1 %v322_v9  ;;  %195 = vmatpush.msra.mxu1 %v46_v27 }
  0x2b   :  { %97 = vperm.xlu1 %277, %v60_v3   ;;  %278 = vset.pattern.permute.xlu2 %v320_v7 }
  0x2c   :  { %163 = vperm.xlu2 %278, %v132_v4   ;;  %124 = vmatpush.msra.mxu0 %v45_v28 }
  0x2d   :  { %196 = vmatpush.msra.mxu1 %v45_v28 }
  0x2e   :  { %125 = vmatpush.msra.mxu0 %v44_v31 }
  0x2f   :  { %197 = vmatpush.msra.mxu1 %v44_v31 }
  0x33   :  { %169 = vperm.xlu1 %277, %v132_v4  }
  0x34   :  { %280 = vset.pattern.permute.xlu2 %v321_v8 }
  0x35   :  { %175 = vperm.xlu2 %280, %v132_v4  }
  0x62   :  { %v140_v16 = vpop.permute.xlu2 %139 }
  0x63   :  { %vm141_vm4 = vcmp.eq.s32.totalorder %v41_v34, %v140_v16 }
  0x64   :  { %v142_v45 = vsel %vm141_vm4, 1, %v316_v1 }
  0x6c   :  { %v80_v23 = vpop.permute.xlu2 %79 }
  0x6d   :  { %vm81_vm5 = vcmp.eq.s32.totalorder %v41_v34, %v80_v23 }
  0x6e   :  { %v82_v46 = vsel %vm81_vm5, 1, %v316_v1 }
  0x75   :  { %v86_v32 = vpop.permute.xlu2 %85 }
  0x76   :  { %vm87_vm7 = vcmp.eq.s32.totalorder %v41_v34, %v86_v32 }
  0x77   :  { %v88_v50 = vsel %vm87_vm7, 1, %v316_v1 }
  0x79   :  { %v74_v22 = vpop.permute.xlu1 %73 }
  0x7a   :  { %v63_v25 = vpop.permute.xlu0 %62  ;;  %vm75_vm2 = vcmp.eq.s32.totalorder %v41_v34, %v74_v22 }
  0x7b   :  { %vm64_vm0 = vcmp.eq.s32.totalorder %v41_v34, %v63_v25  ;;  %v76_v41 = vsel %vm75_vm2, 1, %v316_v1 }
  0x7c   :  { %v65_v36 = vsel %vm64_vm0, 1, %v316_v1 }
  0x7d   :  { %v158_v38 = vpop.permute.xlu2 %157 }
  0x7e   :  { %vm159_vm11 = vcmp.eq.s32.totalorder %v41_v34, %v158_v38 }
  0x7f   :  { %v160_v63 = vsel %vm159_vm11, 1, %v316_v1 }
  0x82   :  { %v135_v29 = vpop.permute.xlu1 %134 }
  0x83   :  { %v68_v33 = vpop.permute.xlu0 %67  ;;  %vm136_vm3 = vcmp.eq.s32.totalorder %v41_v34, %v135_v29 }
  0x84   :  { %vm69_vm1 = vcmp.eq.s32.totalorder %v41_v34, %v68_v33  ;;  %v137_v44 = vsel %vm136_vm3, 1, %v316_v1 }
  0x85   :  { %v70_v37 = vsel %vm69_vm1, 1, %v316_v1  ;;  %v143_v48 = vadd.s32 %v142_v45, %v137_v44 }
  0x86   :  { %v71_v39 = vadd.s32 %v70_v37, %v65_v36  ;;  %v164_v51 = vpop.permute.xlu2 %163 }
  0x87   :  { %vm165_vm13 = vcmp.eq.s32.totalorder %v41_v34, %v164_v51 }
  0x88   :  { %v77_v42 = vadd.s32 %v76_v41, %v71_v39  ;;  %v166_v4 = vsel %vm165_vm13, 1, %v316_v1 }
  0x8a   :  { %v83_v49 = vadd.s32 %v82_v46, %v77_v42 }
  0x8b   :  { %v146_v35 = vpop.permute.xlu1 %145 }
  0x8c   :  { %v152_v40 = vpop.permute.xlu0 %151  ;;  %vm147_vm6 = vcmp.eq.s32.totalorder %v41_v34, %v146_v35  ;;  %v89_v56 = vadd.s32 %v88_v50, %v83_v49 }
  0x8d   :  { %v148_v47 = vsel %vm147_vm6, 1, %v316_v1  ;;  %vm153_vm8 = vcmp.eq.s32.totalorder %v41_v34, %v152_v40  ;;  %vm249_vm6 = vcmask 7168  }
  0x8e   :  { %v149_v53 = vadd.s32 %v148_v47, %v143_v48  ;;  %v154_v54 = vsel %vm153_vm8, 1, %v316_v1 }
  0x8f   :  { %v176_v0 = vpop.permute.xlu2 %175 }
  0x90   :  { %v155_v58 = vadd.s32 %v154_v54, %v149_v53  ;;  %vm177_vm14 = vcmp.eq.s32.totalorder %v41_v34, %v176_v0 }
  0x91   :  { %v178_v9 = vsel %vm177_vm14, 1, %v316_v1 }
  0x92   :  { %v161_v2 = vadd.s32 %v160_v63, %v155_v58 }
  0x94   :  { %v92_v43 = vpop.permute.xlu1 %91  ;;  %v167_v7 = vadd.s32 %v166_v4, %v161_v2 }
  0x95   :  { %vm93_vm9 = vcmp.eq.s32.totalorder %v41_v34, %v92_v43  ;;  %v104_v52 = vpop.permute.xlu0 %103 }
  0x96   :  { %v94_v55 = vsel %vm93_vm9, 1, %v316_v1  ;;  %vm105_vm10 = vcmp.eq.s32.totalorder %v41_v34, %v104_v52 }
  0x97   :  { %v95_v59 = vadd.s32 %v94_v55, %v89_v56  ;;  %v106_v61 = vsel %vm105_vm10, 1, %v316_v1 }
  0x9d   :  { %v98_v57 = vpop.permute.xlu1 %97 }
  0x9e   :  { %vm99_vm12 = vcmp.eq.s32.totalorder %v41_v34, %v98_v57 }
  0x9f   :  { %v100_v60 = vsel %vm99_vm12, 1, %v316_v1 }
  0xa0   :  { %v101_v62 = vadd.s32 %v100_v60, %v95_v59 }
  0xa2   :  { %v107_v3 = vadd.s32 %v106_v61, %v101_v62 }
  0xa4   :  { %v109_v5 = vcvt.s32.f32 %v107_v3 }
  0xa5   :  { %v170_v6 = vpop.permute.xlu1 %169 }
  0xa6   :  { %vm171_vm15 = vcmp.eq.s32.totalorder %v41_v34, %v170_v6  ;;  %126 = vmatmul.f32.vlgmr.msra.gmra.mxu0 %v109_v5 }
  0xa7   :  { %v172_v8 = vsel %vm171_vm15, 1, %v316_v1 }
  0xa8   :  { %v173_v10 = vadd.s32 %v172_v8, %v167_v7 }
  0xaa   :  { %v179_v11 = vadd.s32 %v178_v9, %v173_v10 }
  0xac   :  { %v181_v12 = vcvt.s32.f32 %v179_v11 }
  0xae   :  { %198 = vmatmul.f32.vlgmr.msra.gmra.mxu1 %v181_v12 }
 0x123   :  { %v127_v14 = vpop.f32.mrf.mxu0 }
 0x124   :  { %v212_v15 = vadd.f32 %v281_v13, %v127_v14 }
 0x126   :  { %v215_v16 = vmul.f32 %v212_v15, %v212_v15 }
 0x128   :  { %216 = vadd.xlane.f32.xlu1 %v215_v16 }
 0x12b   :  { %v199_v17 = vpop.f32.mrf.mxu1 }
 0x12c   :  { %v214_v18 = vadd.f32 %v281_v13, %v199_v17 }
 0x12e   :  { %v229_v19 = vmul.f32 %v214_v18, %v214_v18  ;;  %v243_v20 = vmul.f32 %v214_v18, %v212_v15 }
 0x130   :  { %230 = vadd.xlane.f32.xlu2 %v229_v19  ;;  %244 = vadd.xlane.f32.xlu0 %v243_v20 }
 0x19b   :  { %v217_v21 = vpop.xlane.xlu1 %216 }
 0x19c   :  { %v218_v1 = vmax.f32 %v217_v21, 1e-24 }
 0x19e   :  { %282 = vrsqrt.f32 %v218_v1  ;;  %vm225_vm1 = vweird.f32 %v218_v1 }
 0x1a3   :  { %v231_v22 = vpop.xlane.xlu2 %230  ;;  %v245_v37 = vpop.xlane.xlu0 %244 }
 0x1a4   :  { %v283_v23 = vpop.eup %282  ;;  %v232_v24 = vmax.f32 %v231_v22, 1e-24 }
 0x1a5   :  { %v220_v25 = vmul.f32 %v283_v23, %v218_v1  ;;  %vm226_vm0 = vweird.f32 %v283_v23 }
 0x1a6   :  { %284 = vrsqrt.f32 %v232_v24  ;;  %vm227_vm2 = vmor %vm225_vm1, %vm226_vm0  ;;  %vm239_vm4 = vweird.f32 %v232_v24 }
 0x1a7   :  { %v221_v26 = vmul.f32 %v283_v23, %v220_v25 }
 0x1a9   :  { %v222_v27 = vmul.f32 0.5, %v221_v26 }
 0x1ab   :  { %v223_v28 = vsub.f32 1.5, %v222_v27 }
 0x1ac   :  { %v285_v29 = vpop.eup %284 }
 0x1ad   :  { %v234_v30 = vmul.f32 %v285_v29, %v232_v24  ;;  %v224_v32 = vmul.f32 %v283_v23, %v223_v28  ;;  %vm240_vm3 = vweird.f32 %v285_v29 }
 0x1ae   :  { %vm241_vm5 = vmor %vm239_vm4, %vm240_vm3 }
 0x1af   :  { %v235_v31 = vmul.f32 %v285_v29, %v234_v30  ;;  %v228_v35 = vsel %vm227_vm2, %v283_v23, %v224_v32 }
 0x1b0   :  { %v246_v38 = vmul.f32 %v245_v37, %v228_v35 }
 0x1b1   :  { %v236_v33 = vmul.f32 0.5, %v235_v31 }
 0x1b3   :  { %v237_v34 = vsub.f32 1.5, %v236_v33 }
 0x1b5   :  { %v238_v36 = vmul.f32 %v285_v29, %v237_v34 }
 0x1b7   :  { %v242_v39 = vsel %vm241_vm5, %v285_v29, %v238_v36 }
 0x1b8   :  { %v247_v40 = vmul.f32 %v246_v38, %v242_v39 }
 0x1ba   :  { %v248_v41 = vsub.f32 1.0, %v247_v40 }
 0x1bc   :  { %250 = vst.msk [vmem:[%s385_s4] sm:$0xff] %vm249_vm6, %v248_v41 }
 0x1bd   :  { %255 = vsyncpa [#allocation5], 1 }

</bundles_post_ra>
